<compile_context>
chip_gen: v6e
topology: v6e:2x2x1
jax: 0.10.0
libtpu: 0.0.40
codegen_flags: <defaults>
</compile_context>

<pallas_src>
import jax
import jax.numpy as jnp
from jax.experimental import pallas as pl
from jax.experimental.pallas import tpu as pltpu


# ----------------------------- Pallas kernel ------------------------------ #

def make_gated_cnn_kernel(filter_sizes, block_b, seq_len, emb_dim, n_filters,
                          np_lanes):
    L, E, F, NP = seq_len, emb_dim, n_filters, np_lanes
    max_fs = max(filter_sizes)

    def kernel(emb_ref, w_ref, b_ref, fcw_ref, fcb_ref, out_ref):
        flat = emb_ref[...]                                  # (Bblk*L, E) bf16

        # --- im2col, built ONCE for max_fs: column block k is the slab shifted
        # up by k rows, so row r of xcol holds emb[r : r+max_fs, :] flattened.
        # Wrapped / cross-example rows only land in window starts the masked
        # pool below never selects.  (pltpu.roll(flat, rows-k, 0) is an XLU
        # alternative; the two-slice concat is kept because packed-bf16
        # sublane rotates are not always lowerable, and only max_fs-1 shifted
        # copies remain after the matmul fusion.)
        cols = [flat]
        for k in range(1, max_fs):
            cols.append(jnp.concatenate([flat[k:, :], flat[:k, :]], axis=0))
        xcol = jnp.concatenate(cols, axis=1)                 # (Bblk*L, max_fs*E)

        # --- fused conv + gate-conv for ALL filter sizes: ONE bf16 MXU matmul
        # with f32 accumulation, ONE (1, 2*NP) bias broadcast.
        sg = jnp.dot(xcol, w_ref[...], preferred_element_type=jnp.float32)
        sg = sg + b_ref[...]                                 # (Bblk*L, 2*NP) f32

        # s / g split on a vreg-aligned 128-lane boundary.
        gated = jnp.tanh(sg[:, :NP]) * jax.nn.sigmoid(sg[:, NP:])  # (Bblk*L, NP)

        # --- vectorized masked global max-pool over valid window starts.
        # Lane c < n_fs*F belongs to filter i = c // F with lout_i = L - fs_i + 1
        # valid window starts.  Padded lanes keep lout = L: their gated values
        # are exactly 0 (zero weights & bias), so they pool to 0 and no lane is
        # ever fully masked (no -inf can reach the fc matmul).
        g3 = gated.reshape(block_b, L, NP)
        pos = jax.lax.broadcasted_iota(jnp.int32, (block_b, L, NP), 1)
        lane = jax.lax.broadcasted_iota(jnp.int32, (1, 1, NP), 2)
        lout = jnp.full((1, 1, NP), L, dtype=jnp.int32)
        for i, fs in enumerate(filter_sizes):
            lout = jnp.where((lane >= i * F) & (lane < (i + 1) * F),
                             L - fs + 1, lout)
        pooled = jnp.max(jnp.where(pos < lout, g3, -jnp.inf), axis=1)  # (Bblk, NP)

        # TODO(synk): nn.Dropout is identity at inference; training-mode
        # masking is not implemented.
        logits = jnp.dot(pooled.astype(jnp.bfloat16), fcw_ref[...],
                         preferred_element_type=jnp.float32) + fcb_ref[...]
        out_ref[...] = logits                                # (Bblk, NOUT) f32

    return kernel


# ------------------------------ wrapper ----------------------------------- #

def gated_cnn_forward(tokens, params, filter_sizes, target_rows=512):
    emb_table = params["embedding"]
    B, L = tokens.shape
    E = emb_table.shape[1]
    F = params["convs"][0][0].shape[2]
    out_dim = params["fc_w"].shape[1]
    n_fs = len(filter_sizes)
    max_fs = max(filter_sizes)

    # Wrap-around im2col is only valid when every filter has >= 1 valid window.
    assert all(fs <= L for fs in filter_sizes), "filter size must be <= seq_len"

    NP = pl.cdiv(n_fs * F, 128) * 128        # gated-feature lanes, 128-padded
    NOUT = pl.cdiv(out_dim, 128) * 128       # fc output lanes, 128-padded

    # Embedding lookup stays in XLA glue.
    # TODO(synk): at realistic vocab/seq sizes, move the gather in-kernel via
    # scalar-prefetched token ids + DMA gather from an HBM (pl.ANY) table.
    emb = emb_table[tokens].astype(jnp.bfloat16)             # (B, L, E)

    # Batch blocking: ~target_rows matmul rows per grid step (512+ rows reach
    # ~85% of HBM roofline); no forced grid split on single-TC v5e/v6e.  When
    # B*L is large the grid naturally has >= 2 "parallel" steps for v7x's TCs.
    bblk = max(1, target_rows // L)
    if bblk < B:
        bblk = min(B, ((bblk + 7) // 8) * 8)  # keep blocks sublane-aligned
    if bblk >= B:
        n_blocks, bblk = 1, B
    else:
        n_blocks = pl.cdiv(B, bblk)
    b_pad = n_blocks * bblk
    if b_pad != B:
        emb = jnp.pad(emb, ((0, b_pad - B), (0, 0), (0, 0)))
    flat = emb.reshape(b_pad * L, E)                         # (Bpad*L, E) bf16

    # Pack conv + gate-conv weights of ALL filter sizes into ONE K-zero-padded,
    # N-concatenated bf16 operand; s-path lanes [0:NP), gate lanes [NP:2NP).
    w_packed = jnp.zeros((max_fs * E, 2 * NP), jnp.float32)
    b_packed = jnp.zeros((1, 2 * NP), jnp.float32)
    for i, (w, wg, b, bg) in enumerate(params["convs"]):
        fs = w.shape[0]
        w_packed = w_packed.at[:fs * E, i * F:(i + 1) * F].set(w.reshape(fs * E, F))
        w_packed = w_packed.at[:fs * E, NP + i * F:NP + (i + 1) * F].set(
            wg.reshape(fs * E, F))
        b_packed = b_packed.at[:, i * F:(i + 1) * F].set(b.reshape(1, F))
        b_packed = b_packed.at[:, NP + i * F:NP + (i + 1) * F].set(bg.reshape(1, F))
    w_packed = w_packed.astype(jnp.bfloat16)                 # (max_fs*E, 2*NP)

    # Lane-dense fc: zero-pad K to NP and N to NOUT; slice back after the call.
    fc_w = jnp.zeros((NP, NOUT), jnp.float32)
    fc_w = fc_w.at[:n_fs * F, :out_dim].set(params["fc_w"]).astype(jnp.bfloat16)
    fc_b = jnp.zeros((1, NOUT), jnp.float32)
    fc_b = fc_b.at[:, :out_dim].set(params["fc_b"].reshape(1, out_dim))

    kernel = make_gated_cnn_kernel(tuple(filter_sizes), bblk, L, E, F, NP)
    rows = bblk * L

    out = pl.pallas_call(
        kernel,
        out_shape=jax.ShapeDtypeStruct((b_pad, NOUT), jnp.float32),
        grid=(n_blocks,),
        in_specs=[
            pl.BlockSpec((rows, E), lambda i: (i, 0)),        # emb slab (blocked)
            pl.BlockSpec(w_packed.shape, lambda i: (0, 0)),   # fused conv weights
            pl.BlockSpec(b_packed.shape, lambda i: (0, 0)),   # fused biases
            pl.BlockSpec(fc_w.shape, lambda i: (0, 0)),       # fc weight (padded)
            pl.BlockSpec(fc_b.shape, lambda i: (0, 0)),       # fc bias (padded)
        ],
        out_specs=pl.BlockSpec((bblk, NOUT), lambda i: (i, 0)),
        compiler_params=pltpu.CompilerParams(
            dimension_semantics=("parallel",)),
        # NOTE: at these shapes the default scoped VMEM limit is ample; raise
        # vmem_limit_bytes here only if Bblk/L/E grow substantially.
    )(flat, w_packed, b_packed, fc_w, fc_b)
    return out[:B, :out_dim]


# --------------------------- pure-JAX reference ---------------------------- #

def gated_cnn_reference(tokens, params, filter_sizes, matmul_dtype=jnp.float32):
    """Reference.  matmul_dtype=bfloat16 mirrors the kernel's MXU operand
    precision (f32 accumulation either way)."""
    emb = params["embedding"][tokens].astype(jnp.float32)    # (B, L, E)
    B, L, E = emb.shape
    x = emb.astype(matmul_dtype)
    pooled_all = []
    for i, fs in enumerate(filter_sizes):
        w, wg, b, bg = params["convs"][i]
        lout = L - fs + 1
        s = jnp.zeros((B, lout, w.shape[2]), jnp.float32)
        g = jnp.zeros_like(s)
        for k in range(fs):
            xs = x[:, k:k + lout, :]
            s = s + jnp.einsum("ble,ef->blf", xs, w[k].astype(matmul_dtype),
                               preferred_element_type=jnp.float32)
            g = g + jnp.einsum("ble,ef->blf", xs, wg[k].astype(matmul_dtype),
                               preferred_element_type=jnp.float32)
        gated = jnp.tanh(s + b) * jax.nn.sigmoid(g + bg)
        pooled_all.append(jnp.max(gated, axis=1))             # (B, F)
    cat = jnp.concatenate(pooled_all, axis=1)
    return jnp.dot(cat.astype(matmul_dtype), params["fc_w"].astype(matmul_dtype),
                   preferred_element_type=jnp.float32) + params["fc_b"]


# ------------------------------- main -------------------------------------- #

if __name__ == "__main__":
    # Module hyper-params (small, consistent with the PyTorch module)
    vocab_size = 100
    embedding_dim = 32       # E
    n_filters = 8            # F
    filter_sizes = (3, 4, 5)
    output_dim = 4
    pad_idx = 0
    batch = 2
    seq_len = 16             # L

    key = jax.random.PRNGKey(0)
    keys = jax.random.split(key, 4 + 4 * len(filter_sizes))

    # Embedding table, with the padding row zeroed (padding_idx semantics).
    emb_table = 0.1 * jax.random.normal(keys[0], (vocab_size, embedding_dim),
                                        jnp.float32)
    emb_table = emb_table.at[pad_idx].set(0.0)

    convs = []
    for i, fs in enumerate(filter_sizes):
        kw, kg = keys[1 + 2 * i], keys[2 + 2 * i]
        # PyTorch Conv2d weight shape is (F, 1, fs, E); re-layout to (fs, E, F).
        w_pt = 0.1 * jax.random.normal(kw, (n_filters, 1, fs, embedding_dim),
                                       jnp.float32)
        wg_pt = 0.1 * jax.random.normal(kg, (n_filters, 1, fs, embedding_dim),
                                        jnp.float32)
        w = jnp.transpose(w_pt[:, 0, :, :], (1, 2, 0))   # (fs, E, F)
        wg = jnp.transpose(wg_pt[:, 0, :, :], (1, 2, 0))
        bias = 0.01 * jnp.arange(n_filters, dtype=jnp.float32).reshape(1, n_filters)
        gbias = -0.01 * jnp.arange(n_filters, dtype=jnp.float32).reshape(1, n_filters)
        convs.append((w, wg, bias, gbias))

    fc_w = 0.1 * jax.random.normal(
        keys[-2], (len(filter_sizes) * n_filters, output_dim), jnp.float32)
    fc_b = 0.05 * jnp.arange(output_dim, dtype=jnp.float32).reshape(1, output_dim)

    params = {"embedding": emb_table, "convs": convs, "fc_w": fc_w, "fc_b": fc_b}
    tokens = jax.random.randint(keys[-1], (batch, seq_len), 0, vocab_size,
                                dtype=jnp.int32)

    out = gated_cnn_forward(tokens, params, filter_sizes)
    out = jax.block_until_ready(out)
    assert out.shape == (batch, output_dim)

    # Tight check vs a reference matching the kernel's bf16 MXU operands.
    ref_bf16 = gated_cnn_reference(tokens, params, filter_sizes, jnp.bfloat16)
    assert jnp.allclose(out, ref_bf16, atol=5e-3, rtol=5e-3), (out, ref_bf16)

    # Loose check vs the full-f32 spec (difference is bf16 operand rounding only).
    ref_f32 = gated_cnn_reference(tokens, params, filter_sizes, jnp.float32)
    assert jnp.allclose(out, ref_f32, atol=3e-2, rtol=3e-2), (out, ref_f32)

    print("KERNEL_OK")
</pallas_src>

<mosaic_0001>
module attributes {stable_mosaic.version = 11 : i64} {
  func.func @kernel(%arg0: i32, %arg1: memref<32x32xbf16, #tpu.memory_space<vmem>>, %arg2: memref<160x256xbf16, #tpu.memory_space<vmem>>, %arg3: memref<1x256xf32, #tpu.memory_space<vmem>>, %arg4: memref<128x128xbf16, #tpu.memory_space<vmem>>, %arg5: memref<1x128xf32, #tpu.memory_space<vmem>>, %arg6: memref<2x128xf32, #tpu.memory_space<vmem>>) attributes {dimension_semantics = [#tpu.dimension_semantics<parallel>], iteration_bounds = array<i64: 1>, scalar_prefetch = 0 : i64, scratch_operands = 0 : i64, tpu.core_type = #tpu.core_type<tc>, window_params = [{transform_indices = @transform_0, window_bounds = array<i64: 32, 32>}, {pipeline_mode = #tpu.pipeline_mode<synchronous>, transform_indices = @transform_1, window_bounds = array<i64: 160, 256>}, {pipeline_mode = #tpu.pipeline_mode<synchronous>, transform_indices = @transform_2, window_bounds = array<i64: 1, 256>}, {pipeline_mode = #tpu.pipeline_mode<synchronous>, transform_indices = @transform_3, window_bounds = array<i64: 128, 128>}, {pipeline_mode = #tpu.pipeline_mode<synchronous>, transform_indices = @transform_4, window_bounds = array<i64: 1, 128>}, {transform_indices = @transform_5, window_bounds = array<i64: 2, 128>}]} {
    %c0 = arith.constant 0 : index
    %c0_0 = arith.constant 0 : index
    %0 = vector.load %arg1[%c0, %c0_0] : memref<32x32xbf16, #tpu.memory_space<vmem>>, vector<32x32xbf16>
    %1 = vector.extract_strided_slice %0 {offsets = [1, 0], sizes = [31, 32], strides = [1, 1]} : vector<32x32xbf16> to vector<31x32xbf16>
    %2 = vector.extract_strided_slice %0 {offsets = [0, 0], sizes = [1, 32], strides = [1, 1]} : vector<32x32xbf16> to vector<1x32xbf16>
    %3 = tpu.concatenate %1, %2 in 0 : vector<31x32xbf16>, vector<1x32xbf16> -> vector<32x32xbf16>
    %4 = vector.extract_strided_slice %0 {offsets = [2, 0], sizes = [30, 32], strides = [1, 1]} : vector<32x32xbf16> to vector<30x32xbf16>
    %5 = vector.extract_strided_slice %0 {offsets = [0, 0], sizes = [2, 32], strides = [1, 1]} : vector<32x32xbf16> to vector<2x32xbf16>
    %6 = tpu.concatenate %4, %5 in 0 : vector<30x32xbf16>, vector<2x32xbf16> -> vector<32x32xbf16>
    %7 = vector.extract_strided_slice %0 {offsets = [3, 0], sizes = [29, 32], strides = [1, 1]} : vector<32x32xbf16> to vector<29x32xbf16>
    %8 = vector.extract_strided_slice %0 {offsets = [0, 0], sizes = [3, 32], strides = [1, 1]} : vector<32x32xbf16> to vector<3x32xbf16>
    %9 = tpu.concatenate %7, %8 in 0 : vector<29x32xbf16>, vector<3x32xbf16> -> vector<32x32xbf16>
    %10 = vector.extract_strided_slice %0 {offsets = [4, 0], sizes = [28, 32], strides = [1, 1]} : vector<32x32xbf16> to vector<28x32xbf16>
    %11 = vector.extract_strided_slice %0 {offsets = [0, 0], sizes = [4, 32], strides = [1, 1]} : vector<32x32xbf16> to vector<4x32xbf16>
    %12 = tpu.concatenate %10, %11 in 0 : vector<28x32xbf16>, vector<4x32xbf16> -> vector<32x32xbf16>
    %13 = tpu.concatenate %0, %3, %6, %9, %12 in 1 : vector<32x32xbf16>, vector<32x32xbf16>, vector<32x32xbf16>, vector<32x32xbf16>, vector<32x32xbf16> -> vector<32x160xbf16>
    %c0_1 = arith.constant 0 : index
    %c0_2 = arith.constant 0 : index
    %14 = vector.load %arg2[%c0_1, %c0_2] : memref<160x256xbf16, #tpu.memory_space<vmem>>, vector<160x256xbf16>
    %cst = arith.constant dense<0.000000e+00> : vector<32x256xf32>
    %15 = tpu.matmul %13, %14, %cst {dimension_numbers = #tpu.dot_dimension_numbers<[1], [0], [0], [1], [0, 0, 1, 1], [], []>} : vector<32x160xbf16>, vector<160x256xbf16>, vector<32x256xf32> -> vector<32x256xf32>
    %c0_3 = arith.constant 0 : index
    %c0_4 = arith.constant 0 : index
    %16 = vector.load %arg3[%c0_3, %c0_4] : memref<1x256xf32, #tpu.memory_space<vmem>>, vector<1x256xf32>
    %17 = vector.broadcast %16 : vector<1x256xf32> to vector<32x256xf32>
    %18 = arith.addf %15, %17 : vector<32x256xf32>
    %19 = vector.extract_strided_slice %18 {offsets = [0, 0], sizes = [32, 128], strides = [1, 1]} : vector<32x256xf32> to vector<32x128xf32>
    %20 = math.tanh %19 : vector<32x128xf32>
    %21 = vector.extract_strided_slice %18 {offsets = [0, 128], sizes = [32, 128], strides = [1, 1]} : vector<32x256xf32> to vector<32x128xf32>
    %22 = arith.negf %21 : vector<32x128xf32>
    %23 = math.exp %22 : vector<32x128xf32>
    %cst_5 = arith.constant 1.000000e+00 : f32
    %24 = vector.broadcast %cst_5 : f32 to vector<32x128xf32>
    %25 = arith.addf %24, %23 : vector<32x128xf32>
    %26 = arith.divf %24, %25 : vector<32x128xf32>
    %27 = arith.mulf %20, %26 : vector<32x128xf32>
    %28 = vector.shape_cast %27 : vector<32x128xf32> to vector<2x16x128xf32>
    %29 = tpu.iota {dimensions = array<i32: 1>} : vector<2x16x128xi32>
    %30 = tpu.iota {dimensions = array<i32: 2>} : vector<1x1x128xi32>
    %c16_i32 = arith.constant 16 : i32
    %31 = vector.broadcast %c16_i32 : i32 to vector<1x1x128xi32>
    %c0_i32 = arith.constant 0 : i32
    %32 = vector.broadcast %c0_i32 : i32 to vector<1x1x128xi32>
    %33 = arith.cmpi sge, %30, %32 : vector<1x1x128xi32>
    %c8_i32 = arith.constant 8 : i32
    %34 = vector.broadcast %c8_i32 : i32 to vector<1x1x128xi32>
    %35 = arith.cmpi slt, %30, %34 : vector<1x1x128xi32>
    %36 = arith.andi %33, %35 : vector<1x1x128xi1>
    %c14_i32 = arith.constant 14 : i32
    %37 = vector.broadcast %c14_i32 : i32 to vector<1x1x128xi32>
    %38 = arith.select %36, %37, %31 : vector<1x1x128xi1>, vector<1x1x128xi32>
    %c8_i32_6 = arith.constant 8 : i32
    %39 = vector.broadcast %c8_i32_6 : i32 to vector<1x1x128xi32>
    %40 = arith.cmpi sge, %30, %39 : vector<1x1x128xi32>
    %c16_i32_7 = arith.constant 16 : i32
    %41 = vector.broadcast %c16_i32_7 : i32 to vector<1x1x128xi32>
    %42 = arith.cmpi slt, %30, %41 : vector<1x1x128xi32>
    %43 = arith.andi %40, %42 : vector<1x1x128xi1>
    %c13_i32 = arith.constant 13 : i32
    %44 = vector.broadcast %c13_i32 : i32 to vector<1x1x128xi32>
    %45 = arith.select %43, %44, %38 : vector<1x1x128xi1>, vector<1x1x128xi32>
    %c16_i32_8 = arith.constant 16 : i32
    %46 = vector.broadcast %c16_i32_8 : i32 to vector<1x1x128xi32>
    %47 = arith.cmpi sge, %30, %46 : vector<1x1x128xi32>
    %c24_i32 = arith.constant 24 : i32
    %48 = vector.broadcast %c24_i32 : i32 to vector<1x1x128xi32>
    %49 = arith.cmpi slt, %30, %48 : vector<1x1x128xi32>
    %50 = arith.andi %47, %49 : vector<1x1x128xi1>
    %c12_i32 = arith.constant 12 : i32
    %51 = vector.broadcast %c12_i32 : i32 to vector<1x1x128xi32>
    %52 = arith.select %50, %51, %45 : vector<1x1x128xi1>, vector<1x1x128xi32>
    %53 = vector.broadcast %52 : vector<1x1x128xi32> to vector<2x16x128xi32>
    %54 = arith.cmpi slt, %29, %53 : vector<2x16x128xi32>
    %cst_9 = arith.constant 0xFF800000 : f32
    %55 = vector.broadcast %cst_9 : f32 to vector<2x16x128xf32>
    %56 = arith.select %54, %28, %55 : vector<2x16x128xi1>, vector<2x16x128xf32>
    %cst_10 = arith.constant dense<0xFF800000> : vector<2x128xf32>
    %57 = vector.multi_reduction <maximumf>, %56, %cst_10 [1] : vector<2x16x128xf32> to vector<2x128xf32>
    %58 = arith.truncf %57 : vector<2x128xf32> to vector<2x128xbf16>
    %c0_11 = arith.constant 0 : index
    %c0_12 = arith.constant 0 : index
    %59 = vector.load %arg4[%c0_11, %c0_12] : memref<128x128xbf16, #tpu.memory_space<vmem>>, vector<128x128xbf16>
    %cst_13 = arith.constant dense<0.000000e+00> : vector<2x128xf32>
    %60 = tpu.matmul %58, %59, %cst_13 {dimension_numbers = #tpu.dot_dimension_numbers<[1], [0], [0], [1], [0, 0, 1, 1], [], []>} : vector<2x128xbf16>, vector<128x128xbf16>, vector<2x128xf32> -> vector<2x128xf32>
    %c0_14 = arith.constant 0 : index
    %c0_15 = arith.constant 0 : index
    %61 = vector.load %arg5[%c0_14, %c0_15] : memref<1x128xf32, #tpu.memory_space<vmem>>, vector<1x128xf32>
    %62 = vector.broadcast %61 : vector<1x128xf32> to vector<2x128xf32>
    %63 = arith.addf %60, %62 : vector<2x128xf32>
    %c0_16 = arith.constant 0 : index
    %c0_17 = arith.constant 0 : index
    %64 = vector.load %arg6[%c0_16, %c0_17] : memref<2x128xf32, #tpu.memory_space<vmem>>, vector<2x128xf32>
    tpu.vector_store %arg6[%c0_16, %c0_17], %63 {strides = array<i32>} : memref<2x128xf32, #tpu.memory_space<vmem>>, vector<2x128xf32>,
    return
  }
  func.func @transform_0(%arg0: i32) -> (i32, i32) {
    %c0_i32 = arith.constant 0 : i32
    %c0_i32_0 = arith.constant 0 : i32
    return %arg0, %c0_i32 : i32, i32
  }
  func.func @transform_1(%arg0: i32) -> (i32, i32) {
    %c0_i32 = arith.constant 0 : i32
    %c0_i32_0 = arith.constant 0 : i32
    %c0_i32_1 = arith.constant 0 : i32
    return %c0_i32, %c0_i32_0 : i32, i32
  }
  func.func @transform_2(%arg0: i32) -> (i32, i32) {
    %c0_i32 = arith.constant 0 : i32
    %c0_i32_0 = arith.constant 0 : i32
    %c0_i32_1 = arith.constant 0 : i32
    return %c0_i32, %c0_i32_0 : i32, i32
  }
  func.func @transform_3(%arg0: i32) -> (i32, i32) {
    %c0_i32 = arith.constant 0 : i32
    %c0_i32_0 = arith.constant 0 : i32
    %c0_i32_1 = arith.constant 0 : i32
    return %c0_i32, %c0_i32_0 : i32, i32
  }
  func.func @transform_4(%arg0: i32) -> (i32, i32) {
    %c0_i32 = arith.constant 0 : i32
    %c0_i32_0 = arith.constant 0 : i32
    %c0_i32_1 = arith.constant 0 : i32
    return %c0_i32, %c0_i32_0 : i32, i32
  }
  func.func @transform_5(%arg0: i32) -> (i32, i32) {
    %c0_i32 = arith.constant 0 : i32
    %c0_i32_0 = arith.constant 0 : i32
    return %arg0, %c0_i32 : i32, i32
  }
}

</mosaic_0001>

<bundles_post_ra>
// kernel: tpu_custom_call.1
= control target key start
LH: loop header
LB: loop body
LE: loop exit
PB: predicated region body
PF: predicated region fallthrough
CT: control target
= control target key end

     0   :  { %10 = vsyncpa [#allocation3], 0  ;;  %s911_s0 = inlined_call_operand.hbm [shape: bf16[32,32], index: 0, kind: input, shape index: {}]   ;;  %s912_s1 = inlined_call_operand.hbm [shape: bf16[160,256], index: 1, kind: input, shape index: {}]   ;;  %s913_s2 = inlined_call_operand.vmem [shape: f32[1,256], index: 2, kind: input, shape index: {}]   ;;  %s914_s3 = inlined_call_operand.hbm [shape: bf16[128,128], index: 3, kind: input, shape index: {}]   ;;  %s915_s4 = inlined_call_operand.vmem [shape: f32[1,128], index: 4, kind: input, shape index: {}]   ;;  %s916_s5 = inlined_call_operand.hbm [shape: f32[2,128], index: 5, kind: output, shape index: {}]  }
   0x1   :  { %11 = vsyncpa [#allocation6], 0 }
   0x2   :  { %12 = vsyncpa [#allocation4], 0  ;;  %s798_s18 = smov [#allocation5]  }
   0x3   :  { %s30_s19 = sshll.u32 %s798_s18, 4  ;;  %s31_s19 = int_to_ptr.vmem [resolvable:$true] %s30_s19 }
   0x4   :  { %s720_s20 = scalar_lea.vmem %s31_s19, 2560  ;;  %p725_p1 = scmp.lt.s32.totalorder %s31_s19, %s31_s19 }
   0x5   :  { %p721_p0 = scmp.ne.s32.totalorder %s31_s19, %s720_s20  ;;  %p726_p2 = scmp.lt.s32.totalorder %s720_s20, %s720_s20 }
   0x7   :  { %p727_p3 = por %p726_p2, %p725_p1 }
   0x9   :  { %p728_p4 = pnand %p727_p3, %p721_p0 }
   0xb   :  { %731 = shalt.err (!%p728_p4)
}
   0xc   :  { %s799_s21 = smov 128   ;;  %s800_s22 = smov 8  }
   0xd   :  { %36 = dma.hbm_to_vmem [thread:$0]  %s912_s1, 2560, %s31_s19, [#allocation6], %s799_s21, %s799_s21, %s800_s22  }
   0xe   :  { %s801_s25 = smov [#allocation2]  }
   0xf   :  { %s18_s26 = sshll.u32 %s801_s25, 4  ;;  %s19_s26 = int_to_ptr.vmem [resolvable:$true] %s18_s26 }
  0x10   :  { %s740_s27 = scalar_lea.vmem %s19_s26, 256  ;;  %p745_p6 = scmp.lt.s32.totalorder %s19_s26, %s19_s26 }
  0x11   :  { %p741_p5 = scmp.ne.s32.totalorder %s19_s26, %s740_s27  ;;  %p746_p7 = scmp.lt.s32.totalorder %s740_s27, %s740_s27 }
  0x13   :  { %p747_p8 = por %p746_p7, %p745_p6 }
  0x15   :  { %p748_p9 = pnand %p747_p8, %p741_p5 }
  0x17   :  { %751 = shalt.err (!%p748_p9)
}
  0x18   :  { %s802_s28 = smov 64   ;;  %s803_s29 = smov 4  }
  0x19   :  { %24 = dma.hbm_to_vmem [thread:$0]  %s911_s0, 256, %s19_s26, [#allocation3], %s802_s28, %s802_s28, %s803_s29  }
  0x1a   :  { %s804_s7 = smov [#allocation7]  }
  0x1b   :  { %s44_s1 = sshll.u32 %s804_s7, 4  ;;  %s45_s1 = int_to_ptr.vmem [resolvable:$true] %s44_s1 }
  0x1c   :  { %s760_s8 = scalar_lea.vmem %s45_s1, 1024  ;;  %p765_p11 = scmp.lt.s32.totalorder %s45_s1, %s45_s1 }
  0x1d   :  { %p761_p10 = scmp.ne.s32.totalorder %s45_s1, %s760_s8  ;;  %p766_p12 = scmp.lt.s32.totalorder %s760_s8, %s760_s8 }
  0x1f   :  { %p767_p13 = por %p766_p12, %p765_p11 }
  0x21   :  { %p768_p0 = pnand %p767_p13, %p761_p10 }
  0x23   :  { %771 = shalt.err (!%p768_p0)
}
  0x24   :  { %50 = dma.hbm_to_vmem [thread:$0]  %s914_s3, 1024, %s45_s1, [#allocation6], %s802_s28, %s802_s28, %s803_s29  }
  0x25   :  { %792 = dma.done.wait [#allocation3], 256  }
  0x26   :  { %793 = vsyncadd [#allocation3], 4294967040 }
  0x27   :  { %794 = dma.done.wait [#allocation6], 3584  }
  0x28   :  { %795 = vsyncadd [#allocation6], 4294963712  ;;  %vm77_vm0 = vsmask.f32 7424  ;;  %v63_v0 = vld [vmem:[#allocation2] sm:$0xf] }
  0x29   :  { %v64_v1 = vld [vmem:[#allocation2 + $0x4] sm:$0xf]  ;;  %v856_v3 = vld [vmem:[#allocation2 + $0x8] sm:$0xff]   ;;  %vm112_vm1 = vsmask.f32 6400  ;;  %v858_v4 = vcombine.low %v63_v0, %v63_v0  ;;  %vm100_vm2 = vcmask 1047552  }
  0x2a   :  { %v854_v2 = vcombine.low %v63_v0, %v64_v1  ;;  %v650_v5 = vld [vmem:[#allocation5 + $0x74] ss:$8 sps:$4 sm:$0xff]   ;;  %v652_v6 = vld [vmem:[#allocation5 + $0x70] ss:$8 sps:$4 sm:$0xff]   ;;  %v86_v9 = vshll.u32 %v856_v3, 16  ;;  %v90_v10 = vshrl.u32 %v856_v3, 16  ;;  %vm869_vm5 = vmand %vm100_vm2, %vm77_vm0 }
  0x2b   :  { %vm103_vm3 = vcmask 1046528   ;;  %v96_v11 = vshll.u32 %v858_v4, 16  ;;  %307 = vmatprep.subr.bf16.mxu0 %v650_v5  ;;  %v653_v12 = vld [vmem:[#allocation5 + $0x64] ss:$8 sps:$4 sm:$0xff]   ;;  %vm129_vm4 = vcmask 1045504   ;;  %v105_v23 = vrot.slane %v856_v3, 1 }
  0x2c   :  { %v79_v7 = vshrl.u32 %v854_v2, 16  ;;  %v81_v8 = vshll.u32 %v854_v2, 16  ;;  %v88_v14 = vrot.slane %v86_v9, 1  ;;  %308 = vmatpush1.bf16.msra.mxu0 %v652_v6  ;;  %v655_v17 = vld [vmem:[#allocation5 + $0x60] ss:$8 sps:$4 sm:$0xff]   ;;  %v116_v18 = vrot.slane %v90_v10, 1  ;;  %vm127_vm7 = vmand %vm103_vm3, %vm112_vm1 }
  0x2d   :  { %v117_v19 = vrot.slane %v86_v9, 2  ;;  %v104_v20 = vrot.slane %v854_v2, 1  ;;  %309 = vmatprep.subr.bf16.mxu0 %v653_v12  ;;  %v98_v24 = vrot.slane %v96_v11, 1  ;;  %v656_v25 = vld [vmem:[#allocation5 + $0x54] ss:$8 sps:$4 sm:$0xff]   ;;  %v121_v29 = vshrl.u32 %v858_v4, 16 }
  0x2e   :  { %v83_v13 = vrot.slane %v81_v8, 1  ;;  %v113_v15 = vrot.slane %v79_v7, 1  ;;  %v114_v16 = vrot.slane %v81_v8, 2  ;;  %v92_v28 = vor.u32 %v90_v10, %v88_v14  ;;  %v658_v32 = vld [vmem:[#allocation5 + $0x50] ss:$8 sps:$4 sm:$0xff]   ;;  %s805_s0 = smov 32  }
  0x2f   :  { %v118_v27 = vor.u32 %v117_v19, %v116_v18  ;;  %v124_v30 = vrot.slane %v96_v11, 2  ;;  %v130_v33 = vrot.slane %v854_v2, 2  ;;  %v131_v34 = vrot.slane %v856_v3, 2  ;;  %v659_v37 = vld [vmem:[#allocation5 + $0x44] ss:$8 sps:$4 sm:$0xff]   ;;  %s806_s3 = smov 96  }
  0x30   :  { %v84_v21 = vor.u32 %v83_v13, %v79_v7  ;;  %v115_v22 = vor.u32 %v114_v16, %v113_v15  ;;  %310 = vmatpush1.bf16.msra.mxu0 %v655_v17  ;;  %v123_v36 = vrot.slane %v121_v29, 1  ;;  %v133_v38 = vrot.slane %v858_v4, 2  ;;  %v661_v45 = vld [vmem:[#allocation5 + $0x40] ss:$8 sps:$4 sm:$0xff]   ;;  %v662_v46 = vld [vmem:[#allocation5 + $0x34] ss:$8 sps:$4 sm:$0xff]  }
  0x31   :  { %311 = vmatprep.subr.bf16.mxu0 %v656_v25  ;;  %v106_v39 = vsel %vm103_vm3, %v104_v20, %v105_v23  ;;  %v107_v40 = vrot.slane %v858_v4, 1  ;;  %vm153_vm6 = vcmask 261120   ;;  %v132_v41 = vsel %vm129_vm4, %v130_v33, %v131_v34  ;;  %v664_v49 = vld [vmem:[#allocation5 + $0x30] ss:$8 sps:$4 sm:$0xff]   ;;  %v665_v50 = vld [vmem:[#allocation5 + $0x24] ss:$8 sps:$4 sm:$0xff]  }
  0x32   :  { %v89_v31 = vsel %vm77_vm0, %v84_v21, %v88_v14  ;;  %v119_v35 = vsel %vm112_vm1, %v115_v22, %v118_v27  ;;  %v102_v42 = vsel %vm869_vm5, %v92_v28, %v98_v24  ;;  %v125_v43 = vor.u32 %v124_v30, %v123_v36  ;;  %590 = vmatprep.mubr.msk.bf16.mxu0 %vm153_vm6, %v132_v41  ;;  %v667_v51 = vld [vmem:[#allocation5 + $0x20] ss:$8 sps:$4 sm:$0xff]   ;;  %v668_v52 = vld [vmem:[#allocation5 + $0x14] ss:$8 sps:$4 sm:$0xff]   ;;  %v670_v53 = vld [vmem:[#allocation5 + $0x10] ss:$8 sps:$4 sm:$0xff]  }
  0x33   :  { %139 = vrot.lane.b32.xlu0 %v89_v31, %s805_s0  ;;  %149 = vrot.lane.b32.xlu1 %v119_v35, %s806_s3  ;;  %v137_v44 = vsel %vm129_vm4, %v131_v34, %v133_v38  ;;  %v111_v47 = vsel %vm103_vm3, %v105_v23, %v107_v40  ;;  %v671_v54 = vld [vmem:[#allocation5 + $0x4] ss:$8 sps:$4 sm:$0xff]   ;;  %v673_v55 = vld [vmem:[#allocation5] ss:$8 sps:$4 sm:$0xff]   ;;  %v674_v56 = vld [vmem:[#allocation5 + $0x94] ss:$8 sps:$4 sm:$0xff]   ;;  %v192_v17 = vlaneseq }
  0x34   :  { %312 = vmatpush1.bf16.msra.mxu0 %v658_v32  ;;  %v128_v48 = vsel %vm127_vm7, %v118_v27, %v125_v43  ;;  %v676_v57 = vld [vmem:[#allocation5 + $0x90] ss:$8 sps:$4 sm:$0xff]   ;;  %v677_v58 = vld [vmem:[#allocation5 + $0x84] ss:$8 sps:$4 sm:$0xff]   ;;  %v679_v59 = vld [vmem:[#allocation5 + $0x80] ss:$8 sps:$4 sm:$0xff]  }
  0x35   :  { %313 = vmatprep.subr.bf16.mxu0 %v659_v37  ;;  %vm158_vm8 = vcmask 523264   ;;  %vm163_vm9 = vcmask 785408   ;;  %v680_v10 = vld [vmem:[#allocation7 + $0x38] sm:$0xff]   ;;  %v807_v11 = vmov 0.0   ;;  %vm808_vm10 = vmmov 0   ;;  %v682_v12 = vld [vmem:[#allocation7 + $0x28] sm:$0xff]  }
  0x36   :  { %614 = vmatprep.subr.bf16.mxu1 %v807_v11  ;;  %630 = vmatprep.mubr.msk.bf16.mxu1 %vm808_vm10, %v807_v11  ;;  %v684_v13 = vld [vmem:[#allocation7 + $0x18] sm:$0xff]   ;;  %v685_v14 = vld [vmem:[#allocation7 + $0x10] sm:$0xff]   ;;  %v686_v15 = vld [vmem:[#allocation7 + $0x8] sm:$0xff]   ;;  %v896_v18 = vshrl.u32 %v192_v17, 7  ;;  %vm458_vm4 = vcmask 1041409   ;;  %s810_s14 = smov [#allocation8]  }
  0x37   :  { %144 = vrot.lane.b32.xlu0 %v106_v39, %s802_s28  ;;  %141 = vrot.lane.b32.xlu1 %v102_v42, %s805_s0  ;;  %v687_v16 = vld [vmem:[#allocation7] sm:$0xff]   ;;  %v190_v20 = vld [vmem:[%s913_s2] sm:$0x3]  ;;  %s557_s15 = sshll.u32 %s810_s14, 4  ;;  %s558_s15 = int_to_ptr.vmem [resolvable:$true] %s557_s15 }
  0x38   :  { %314 = vmatpush1.bf16.msra.mxu0 %v661_v45  ;;  %615 = vmatpush3.bf16.msra.mxu1 %v680_v10  ;;  %v198_v19 = vsub.s32 1, %v896_v18  ;;  %v194_v34 = vsub.s32 0, %v896_v18  ;;  %v396_v45 = vand.u32 127, %v192_v17  ;;  %s772_s16 = scalar_lea.vmem %s558_s15, 32  ;;  %p777_p2 = scmp.lt.s32.totalorder %s558_s15, %s558_s15 }
  0x39   :  { %315 = vmatprep.subr.bf16.mxu0 %v662_v46  ;;  %616 = vmatprep.subr.bf16.mxu1 %v807_v11  ;;  %p773_p1 = scmp.ne.s32.totalorder %s558_s15, %s772_s16  ;;  %p778_p3 = scmp.lt.s32.totalorder %s772_s16, %s772_s16 }
  0x3a   :  { %v199_v21 = vrot.slane %v190_v20, %v198_v19  ;;  %v195_v38 = vrot.slane %v190_v20, %v194_v34  ;;  %vm398_vm11 = vcmp.lt.s32.totalorder %v396_v45, 8  ;;  %vm401_vm12 = vcmp.ge.s32.totalorder %v396_v45, 8 }
  0x3b   :  { %146 = vrot.lane.b32.xlu0 %v111_v47, %s802_s28  ;;  %151 = vrot.lane.b32.xlu1 %v128_v48, %s806_s3  ;;  %vm402_vm13 = vcmp.lt.s32.totalorder %v396_v45, 16  ;;  %vm405_vm15 = vcmp.ge.s32.totalorder %v396_v45, 16  ;;  %vm406_vm0 = vcmp.lt.s32.totalorder %v396_v45, 24  ;;  %p779_p4 = por %p778_p3, %p777_p2 }
  0x3c   :  { %316 = vmatpush1.bf16.msra.mxu0 %v664_v49  ;;  %vm403_vm14 = vmand %vm401_vm12, %vm402_vm13 }
  0x3d   :  { %317 = vmatprep.subr.bf16.mxu0 %v665_v50  ;;  %vm407_vm1 = vmand %vm405_vm15, %vm406_vm0  ;;  %p780_p5 = pnand %p779_p4, %p773_p1 }
  0x40   :  { %318 = vmatpush1.bf16.msra.mxu0 %v667_v51  ;;  %v809_v51 = vmov 16  }
  0x41   :  { %319 = vmatprep.subr.bf16.mxu0 %v668_v52  ;;  %v400_v52 = vsel %vm398_vm11, 14, %v809_v51 }
  0x44   :  { %320 = vmatpush1.bf16.msra.mxu0 %v670_v53 }
  0x45   :  { %321 = vmatprep.subr.bf16.mxu0 %v671_v54 }
  0x48   :  { %322 = vmatpush1.bf16.msra.mxu0 %v673_v55  ;;  %v404_v55 = vsel %vm403_vm14, 13, %v400_v52 }
  0x49   :  { %335 = vmatprep.subr.bf16.mxu0 %v674_v56 }
  0x4c   :  { %336 = vmatpush2.bf16.msra.mxu0 %v676_v57  ;;  %v394_v57 = vadd.s32 8, %v896_v18 }
  0x4d   :  { %337 = vmatprep.subr.bf16.mxu0 %v677_v58  ;;  %v408_v58 = vsel %vm407_vm1, 12, %v404_v55 }
  0x4e   :  { %vm409_vm2 = vcmp.lt.s32.totalorder %v896_v18, %v408_v58  ;;  %vm410_vm3 = vcmp.lt.s32.totalorder %v394_v57, %v408_v58 }
  0x50   :  { %338 = vmatpush2.bf16.msra.mxu0 %v679_v59 }
  0xa5   :  { %v140_v60 = vpop.permute.xlu0 %139  ;;  %v150_v61 = vpop.permute.xlu1 %149 }
  0xa6   :  { %v155_v62 = vsel %vm153_vm6, %v854_v2, %v140_v60  ;;  %v681_v2 = vld [vmem:[#allocation7 + $0x30] sm:$0xff]  }
  0xa7   :  { %617 = vmatpush3.bf16.msra.mxu1 %v681_v2 }
  0xa8   :  { %618 = vmatprep.subr.bf16.mxu1 %v807_v11 }
  0xa9   :  { %v145_v63 = vpop.permute.xlu0 %144  ;;  %v142_v1 = vpop.permute.xlu1 %141 }
  0xaa   :  { %v160_v0 = vsel %vm158_vm8, %v155_v62, %v145_v63  ;;  %v157_v5 = vsel %vm153_vm6, %v856_v3, %v142_v1  ;;  %v683_v3 = vld [vmem:[#allocation7 + $0x20] sm:$0xff]  }
  0xab   :  { %v165_v4 = vsel %vm163_vm9, %v160_v0, %v150_v61  ;;  %619 = vmatpush3.bf16.msra.mxu1 %v682_v12 }
  0xac   :  { %340 = vmatmul.mubr.bf16.vlgmr.msra.gmra.mxu0 %v165_v4  ;;  %620 = vmatprep.subr.bf16.mxu1 %v807_v11 }
  0xad   :  { %v147_v6 = vpop.permute.xlu0 %146  ;;  %591 = vmatprep.mubr.msk.bf16.mxu0 %vm153_vm6, %v137_v44  ;;  %v152_v8 = vpop.permute.xlu1 %151 }
  0xae   :  { %v162_v7 = vsel %vm158_vm8, %v157_v5, %v147_v6 }
  0xaf   :  { %v168_v9 = vsel %vm163_vm9, %v162_v7, %v152_v8  ;;  %621 = vmatpush3.bf16.msra.mxu1 %v683_v3 }
  0xb0   :  { %622 = vmatprep.subr.bf16.mxu1 %v807_v11 }
  0xb3   :  { %623 = vmatpush3.bf16.msra.mxu1 %v684_v13 }
  0xb4   :  { %350 = vmatmul.mubr.bf16.gmra.mxu0 %v168_v9  ;;  %624 = vmatprep.subr.bf16.mxu1 %v807_v11 }
  0xb7   :  { %625 = vmatpush3.bf16.msra.mxu1 %v685_v14 }
  0xb8   :  { %626 = vmatprep.subr.bf16.mxu1 %v807_v11 }
  0xbb   :  { %627 = vmatpush3.bf16.msra.mxu1 %v686_v15 }
  0xbc   :  { %628 = vmatprep.subr.bf16.mxu1 %v807_v11 }
  0xbf   :  { %629 = vmatpush3.bf16.msra.mxu1 %v687_v16 }
 0x16c   :  { %v341_v22 = vpop.f32.mrf.mxu0 }
 0x16d   :  { %v342_v41 = vadd.f32 %v341_v22, %v195_v38 }
 0x16e   :  { %v343_v23 = vpop.f32.mrf.mxu0 }
 0x16f   :  { %v344_v24 = vadd.f32 %v343_v23, %v199_v21 }
 0x170   :  { %v345_v25 = vpop.f32.mrf.mxu0 }
 0x171   :  { %v592_v26 = vmul.f32 -1.442695, %v344_v24  ;;  %v346_v43 = vadd.f32 %v345_v25, %v195_v38 }
 0x172   :  { %v347_v27 = vpop.f32.mrf.mxu0 }
 0x173   :  { %688 = vpow2.f32 %v592_v26  ;;  %v348_v28 = vadd.f32 %v347_v27, %v199_v21 }
 0x174   :  { %v351_v29 = vpop.f32.mrf.mxu0 }
 0x175   :  { %v593_v30 = vmul.f32 -1.442695, %v348_v28  ;;  %v352_v48 = vadd.f32 %v351_v29, %v195_v38 }
 0x176   :  { %v353_v31 = vpop.f32.mrf.mxu0 }
 0x177   :  { %690 = vpow2.f32 %v593_v30  ;;  %v354_v32 = vadd.f32 %v353_v31, %v199_v21  ;;  %v596_v30 = vld [vmem:[%s915_s4] ss:$0 sm:$0xff] }
 0x178   :  { %v355_v33 = vpop.f32.mrf.mxu0 }
 0x179   :  { %v594_v35 = vmul.f32 -1.442695, %v354_v32  ;;  %v356_v50 = vadd.f32 %v355_v33, %v195_v38 }
 0x17a   :  { %v357_v36 = vpop.f32.mrf.mxu0 }
 0x17b   :  { %692 = vpow2.f32 %v594_v35  ;;  %v358_v37 = vadd.f32 %v357_v36, %v199_v21 }
 0x17d   :  { %v595_v39 = vmul.f32 -1.442695, %v358_v37 }
 0x17f   :  { %694 = vpow2.f32 %v595_v39 }
 0x180   :  { %v689_v40 = vpop.eup %688 }
 0x181   :  { %v376_v42 = vadd.f32 1.0, %v689_v40 }
 0x183   :  { %696 = vrcp.f32 %v376_v42 }
 0x184   :  { %v691_v44 = vpop.eup %690  ;;  %698 = vtanh.f32 %v342_v41 }
 0x185   :  { %v377_v46 = vadd.f32 1.0, %v691_v44  ;;  %700 = vtanh.f32 %v346_v43 }
 0x187   :  { %702 = vrcp.f32 %v377_v46 }
 0x188   :  { %v693_v47 = vpop.eup %692 }
 0x189   :  { %v378_v49 = vadd.f32 1.0, %v693_v47 }
 0x18b   :  { %704 = vrcp.f32 %v378_v49 }
 0x18c   :  { %v695_v53 = vpop.eup %694  ;;  %706 = vtanh.f32 %v352_v48 }
 0x18d   :  { %v379_v54 = vadd.f32 1.0, %v695_v53  ;;  %708 = vtanh.f32 %v356_v50 }
 0x18f   :  { %710 = vrcp.f32 %v379_v54 }
 0x190   :  { %v697_v56 = vpop.eup %696 }
 0x191   :  { %v699_v59 = vpop.eup %698 }
 0x192   :  { %v701_v60 = vpop.eup %700  ;;  %v388_v61 = vmul.f32 %v699_v59, %v697_v56 }
 0x194   :  { %v703_v62 = vpop.eup %702  ;;  %v411_v0 = vsel %vm409_vm2, %v388_v61, -inf }
 0x195   :  { %v389_v63 = vmul.f32 %v703_v62, %v701_v60 }
 0x197   :  { %v412_v1 = vsel %vm410_vm3, %v389_v63, -inf }
 0x198   :  { %v705_v4 = vpop.eup %704  ;;  %v415_v5 = vmax.f32 %v411_v0, %v412_v1 }
 0x199   :  { %v707_v6 = vpop.eup %706 }
 0x19a   :  { %v416_v7 = vrot.slane %v415_v5, 4  ;;  %v709_v8 = vpop.eup %708  ;;  %v390_v9 = vmul.f32 %v707_v6, %v705_v4 }
 0x19c   :  { %v711_v10 = vpop.eup %710  ;;  %v417_v11 = vmax.f32 %v415_v5, %v416_v7  ;;  %v413_v3 = vsel %vm409_vm2, %v390_v9, -inf }
 0x19d   :  { %v391_v2 = vmul.f32 %v711_v10, %v709_v8 }
 0x19e   :  { %v418_v12 = vrot.slane %v417_v11, 2 }
 0x19f   :  { %v414_v13 = vsel %vm410_vm3, %v391_v2, -inf }
 0x1a0   :  { %v419_v14 = vmax.f32 %v417_v11, %v418_v12  ;;  %v422_v15 = vmax.f32 %v413_v3, %v414_v13 }
 0x1a2   :  { %v423_v16 = vrot.slane %v422_v15, 4  ;;  %v420_v17 = vrot.slane %v419_v14, 1 }
 0x1a4   :  { %v424_v18 = vmax.f32 %v422_v15, %v423_v16  ;;  %v421_v20 = vmax.f32 %v419_v14, %v420_v17 }
 0x1a6   :  { %v425_v19 = vrot.slane %v424_v18, 2  ;;  %v429_v24 = vpack.c.bf16 %v421_v20, %v421_v20 }
 0x1a8   :  { %v426_v21 = vmax.f32 %v424_v18, %v425_v19  ;;  %v456_v26 = vunpack.c.l.b16 %v429_v24 }
 0x1aa   :  { %v427_v22 = vrot.slane %v426_v21, 1 }
 0x1ac   :  { %v428_v23 = vmax.f32 %v426_v21, %v427_v22 }
 0x1ae   :  { %v430_v25 = vpack.c.bf16 %v428_v23, %v428_v23 }
 0x1b0   :  { %v457_v27 = vunpack.c.l.b16 %v430_v25 }
 0x1b2   :  { %v459_v28 = vsel %vm458_vm4, %v457_v27, %v456_v26 }
 0x1b3   :  { %v460_v29 = vpack.c.b16 %v459_v28, %v459_v28 }
 0x1b5   :  { %631 = vmatmul.mubr.bf16.vlgmr.msra.gmra.mxu1 %v460_v29 }
 0x275   :  { %v544_v31 = vpop.f32.mrf.mxu1 }
 0x276   :  { %v545_v32 = vadd.f32 %v596_v30, %v544_v31 }
 0x277   :  { %v632_v33 = vpop.f32.mrf.mxu1 }
 0x278   :  { %550 = vst [vmem:[#allocation8] sm:$0x3] %v545_v32 }
 0x279   :  { %v547_v34 = vpop.f32.mrf.mxu1 }
 0x27a   :  { %783 = shalt.err (!%p780_p5)
}
 0x27b   :  { %560 = dma.vmem_to_hbm [thread:$0]  %s558_s15, 32, %s916_s5, [#allocation4]   ;;  %v633_v35 = vpop.f32.mrf.mxu1 }
 0x27c   :  { %796 = dma.done.wait [#allocation4], 32  }
 0x27d   :  { %797 = vsyncadd [#allocation4], 4294967264 }
 0x27e   :  { %564 = vsyncpa [#allocation3], 1 }
 0x27f   :  { %565 = vsyncpa [#allocation6], 1 }
 0x280   :  { %566 = vsyncpa [#allocation4], 1 }

</bundles_post_ra>
